<compile_context>
chip_gen: v5e
topology: v5e:2x2
jax: 0.10.0
libtpu: 0.0.40
codegen_flags: <defaults>
</compile_context>

<pallas_src>
import functools

import jax
import jax.numpy as jnp
from jax.experimental import pallas as pl
from jax.experimental.pallas import tpu as pltpu

# Constants from the PyTorch module: K.Normalize(mean=[0.0], std=[1.0])
_MEAN = 0.0
_STD = 1.0


def _interp_matrix(out_size: int, in_size: int) -> jnp.ndarray:
    """Bilinear interpolation matrix with align_corners=True (rows sum to 1)."""
    if out_size == 1:
        src = jnp.zeros((1,), dtype=jnp.float32)
    else:
        src = jnp.arange(out_size, dtype=jnp.float32) * (
            (in_size - 1) / (out_size - 1)
        )
    i0 = jnp.clip(jnp.floor(src).astype(jnp.int32), 0, in_size - 1)
    i1 = jnp.clip(i0 + 1, 0, in_size - 1)
    w1 = src - i0.astype(jnp.float32)
    w0 = 1.0 - w1
    rows = jnp.arange(out_size)
    m = jnp.zeros((out_size, in_size), dtype=jnp.float32)
    m = m.at[rows, i0].add(w0)
    m = m.at[rows, i1].add(w1)
    return m


def _aug_kernel(vf_ref, hf_ref, ah_ref, awt_ref, x_ref, o_ref, *,
                channels, compute_dtype, offset):
    # vf_ref / hf_ref: scalar-prefetch flip bits (only used by the index_maps)
    # ah_ref : (1, Hout, Hin)  interp matrix, vflip + 1/std folded in (compute_dtype)
    # awt_ref: (1, Win, Wout)  transposed interp matrix, hflip folded in (compute_dtype)
    # x_ref  : (1, C, Hin, Win)  one full sample (native dtype)
    # o_ref  : (1, C, Hout, Wout)
    del vf_ref, hf_ref
    ah = ah_ref[0]
    awt = awt_ref[0]
    for ch in range(channels):  # static unroll; channel count is small
        xc = x_ref[0, ch].astype(compute_dtype)
        tmp = jnp.dot(ah, xc, preferred_element_type=jnp.float32)        # (Hout, Win)
        res = jnp.dot(tmp.astype(compute_dtype), awt,
                      preferred_element_type=jnp.float32)                # (Hout, Wout)
        if offset != 0.0:  # compile-time fold of mean/std; skipped for (0, 1)
            res = res - offset
        o_ref[0, ch] = res.astype(o_ref.dtype)


@functools.partial(jax.jit, static_argnames=("size", "split", "compute_dtype"))
def cls_data_augmentation(image, label, rng_key=None, *, size, split="train",
                          compute_dtype=jnp.bfloat16):
    """Pallas equivalent of ClsDataAugmentation.forward.

    image : (N, C, Hin, Win), any real dtype (cast happens inside the kernel)
    label : passed through unchanged
    rng_key: traced jax.random key (required for split='train')
    Returns (x_out, label); x_out has shape (C, Hout, Wout) if N == 1 else
    (N, C, Hout, Wout)  (torch's .squeeze(0) semantics).
    """
    n, c, hin, win = image.shape
    hout, wout = size

    # Fold Normalize into the resize: resize((x-m)/s) == resize(x)/s - m/s.
    ah = _interp_matrix(hout, hin) * (1.0 / _STD)          # (Hout, Hin)
    awt = _interp_matrix(wout, win).T                      # (Win, Wout)
    offset = _MEAN / _STD

    # Only two variants of each matrix (flip / no-flip); per-sample selection is
    # done in the index_map through the scalar-prefetch flip bits.
    ah_variants = jnp.stack([ah, ah[::-1, :]], axis=0).astype(compute_dtype)    # vflip
    awt_variants = jnp.stack([awt, awt[:, ::-1]], axis=0).astype(compute_dtype)  # hflip

    if split == "train":
        if rng_key is None:
            raise ValueError("rng_key is required for split='train'")
        kh, kv = jax.random.split(rng_key)
        hflip = jax.random.bernoulli(kh, 0.5, (n,)).astype(jnp.int32)
        vflip = jax.random.bernoulli(kv, 0.5, (n,)).astype(jnp.int32)
    else:
        hflip = jnp.zeros((n,), jnp.int32)
        vflip = jnp.zeros((n,), jnp.int32)

    kernel = functools.partial(_aug_kernel, channels=c,
                               compute_dtype=compute_dtype, offset=offset)

    # Explicit VMEM budget; cap at 64 MiB so the same tiling also fits v7x.
    in_bytes = c * hin * win * image.dtype.itemsize
    out_bytes = c * hout * wout * 4
    mat_bytes = 2 * (hout * hin + win * wout) * jnp.dtype(compute_dtype).itemsize
    vmem_limit = int(min(64 * 2**20,
                         max(32 * 2**20, 4 * (in_bytes + out_bytes) + 2 * mat_bytes)))

    out = pl.pallas_call(
        kernel,
        out_shape=jax.ShapeDtypeStruct((n, c, hout, wout), jnp.float32),
        grid_spec=pltpu.PrefetchScalarGridSpec(
            num_scalar_prefetch=2,          # vflip, hflip -> SMEM
            grid=(n,),
            in_specs=[
                pl.BlockSpec((1, hout, hin), lambda i, vf, hf: (vf[i], 0, 0)),   # Ah
                pl.BlockSpec((1, win, wout), lambda i, vf, hf: (hf[i], 0, 0)),   # AwT
                pl.BlockSpec((1, c, hin, win), lambda i, vf, hf: (i, 0, 0, 0)),  # x
            ],
            out_specs=pl.BlockSpec((1, c, hout, wout),
                                   lambda i, vf, hf: (i, 0, 0, 0)),
        ),
        compiler_params=pltpu.CompilerParams(
            dimension_semantics=("parallel",),
            vmem_limit_bytes=vmem_limit,
        ),
    )(vflip, hflip, ah_variants, awt_variants, image)

    # torch .squeeze(0): drop leading dim only if it is 1
    x_out = out[0] if n == 1 else out
    return x_out, label


if __name__ == "__main__":
    key = jax.random.PRNGKey(0)
    k_img, k_lab, k_flip = jax.random.split(key, 3)

    # small shapes consistent with the module: NCHW image batch + labels
    N, C, H, W = 2, 4, 16, 16
    SIZE = (32, 32)

    image = jax.random.uniform(k_img, (N, C, H, W), dtype=jnp.float32)
    label = jax.random.randint(k_lab, (N,), 0, 45)  # RESISC45-style class labels

    # train path: Normalize + Resize + random H/V flips (fresh traced key per call)
    x_out, lab_out = cls_data_augmentation(image, label, k_flip,
                                           size=SIZE, split="train")
    jax.block_until_ready(x_out)
    jax.block_until_ready(lab_out)
    assert x_out.shape == (N, C, SIZE[0], SIZE[1]), x_out.shape
    assert x_out.dtype == jnp.float32

    # eval path: Normalize + Resize only
    x_eval, _ = cls_data_augmentation(image, label, size=SIZE, split="val")
    jax.block_until_ready(x_eval)
    assert x_eval.shape == (N, C, SIZE[0], SIZE[1]), x_eval.shape

    print("KERNEL_OK")
</pallas_src>

<mosaic_0001>
module attributes {stable_mosaic.version = 11 : i64} {
  func.func @_aug_kernel(%arg0: i32, %arg1: memref<2xi32, #tpu.memory_space<smem>>, %arg2: memref<2xi32, #tpu.memory_space<smem>>, %arg3: memref<1x32x16xbf16, #tpu.memory_space<vmem>>, %arg4: memref<1x16x32xbf16, #tpu.memory_space<vmem>>, %arg5: memref<1x4x16x16xf32, #tpu.memory_space<vmem>>, %arg6: memref<1x4x32x32xf32, #tpu.memory_space<vmem>>) attributes {dimension_semantics = [#tpu.dimension_semantics<parallel>], iteration_bounds = array<i64: 2>, scalar_prefetch = 2 : i64, scratch_operands = 0 : i64, tpu.core_type = #tpu.core_type<tc>, window_params = [{transform_indices = @transform_0, window_bounds = array<i64: 1, 32, 16>}, {transform_indices = @transform_1, window_bounds = array<i64: 1, 16, 32>}, {transform_indices = @transform_2, window_bounds = array<i64: 1, 4, 16, 16>}, {transform_indices = @transform_3, window_bounds = array<i64: 1, 4, 32, 32>}]} {
    %c0 = arith.constant 0 : index
    %c0_0 = arith.constant 0 : index
    %c0_1 = arith.constant 0 : index
    %0 = vector.load %arg3[%c0, %c0_0, %c0_1] : memref<1x32x16xbf16, #tpu.memory_space<vmem>>, vector<1x32x16xbf16>
    %1 = vector.shape_cast %0 : vector<1x32x16xbf16> to vector<32x16xbf16>
    %c0_2 = arith.constant 0 : index
    %c0_3 = arith.constant 0 : index
    %c0_4 = arith.constant 0 : index
    %2 = vector.load %arg4[%c0_2, %c0_3, %c0_4] : memref<1x16x32xbf16, #tpu.memory_space<vmem>>, vector<1x16x32xbf16>
    %3 = vector.shape_cast %2 : vector<1x16x32xbf16> to vector<16x32xbf16>
    %c0_5 = arith.constant 0 : index
    %c0_6 = arith.constant 0 : index
    %c0_7 = arith.constant 0 : index
    %c0_8 = arith.constant 0 : index
    %4 = vector.load %arg5[%c0_5, %c0_6, %c0_7, %c0_8] : memref<1x4x16x16xf32, #tpu.memory_space<vmem>>, vector<1x1x16x16xf32>
    %5 = vector.shape_cast %4 : vector<1x1x16x16xf32> to vector<16x16xf32>
    %6 = arith.truncf %5 : vector<16x16xf32> to vector<16x16xbf16>
    %cst = arith.constant dense<0.000000e+00> : vector<32x16xf32>
    %7 = tpu.matmul %1, %6, %cst {dimension_numbers = #tpu.dot_dimension_numbers<[1], [0], [0], [1], [0, 0, 1, 1], [], []>} : vector<32x16xbf16>, vector<16x16xbf16>, vector<32x16xf32> -> vector<32x16xf32>
    %8 = arith.truncf %7 : vector<32x16xf32> to vector<32x16xbf16>
    %cst_9 = arith.constant dense<0.000000e+00> : vector<32x32xf32>
    %9 = tpu.matmul %8, %3, %cst_9 {dimension_numbers = #tpu.dot_dimension_numbers<[1], [0], [0], [1], [0, 0, 1, 1], [], []>} : vector<32x16xbf16>, vector<16x32xbf16>, vector<32x32xf32> -> vector<32x32xf32>
    %c0_10 = arith.constant 0 : index
    %c0_11 = arith.constant 0 : index
    %c0_12 = arith.constant 0 : index
    %c0_13 = arith.constant 0 : index
    %10 = vector.load %arg6[%c0_10, %c0_11, %c0_12, %c0_13] : memref<1x4x32x32xf32, #tpu.memory_space<vmem>>, vector<1x1x32x32xf32>
    %11 = vector.shape_cast %10 : vector<1x1x32x32xf32> to vector<32x32xf32>
    %12 = vector.shape_cast %9 : vector<32x32xf32> to vector<1x1x32x32xf32>
    tpu.vector_store %arg6[%c0_10, %c0_11, %c0_12, %c0_13], %12 {strides = array<i32>} : memref<1x4x32x32xf32, #tpu.memory_space<vmem>>, vector<1x1x32x32xf32>,
    %c0_14 = arith.constant 0 : index
    %c1 = arith.constant 1 : index
    %c0_15 = arith.constant 0 : index
    %c0_16 = arith.constant 0 : index
    %13 = vector.load %arg5[%c0_14, %c1, %c0_15, %c0_16] : memref<1x4x16x16xf32, #tpu.memory_space<vmem>>, vector<1x1x16x16xf32>
    %14 = vector.shape_cast %13 : vector<1x1x16x16xf32> to vector<16x16xf32>
    %15 = arith.truncf %14 : vector<16x16xf32> to vector<16x16xbf16>
    %cst_17 = arith.constant dense<0.000000e+00> : vector<32x16xf32>
    %16 = tpu.matmul %1, %15, %cst_17 {dimension_numbers = #tpu.dot_dimension_numbers<[1], [0], [0], [1], [0, 0, 1, 1], [], []>} : vector<32x16xbf16>, vector<16x16xbf16>, vector<32x16xf32> -> vector<32x16xf32>
    %17 = arith.truncf %16 : vector<32x16xf32> to vector<32x16xbf16>
    %cst_18 = arith.constant dense<0.000000e+00> : vector<32x32xf32>
    %18 = tpu.matmul %17, %3, %cst_18 {dimension_numbers = #tpu.dot_dimension_numbers<[1], [0], [0], [1], [0, 0, 1, 1], [], []>} : vector<32x16xbf16>, vector<16x32xbf16>, vector<32x32xf32> -> vector<32x32xf32>
    %c0_19 = arith.constant 0 : index
    %c1_20 = arith.constant 1 : index
    %c0_21 = arith.constant 0 : index
    %c0_22 = arith.constant 0 : index
    %19 = vector.load %arg6[%c0_19, %c1_20, %c0_21, %c0_22] : memref<1x4x32x32xf32, #tpu.memory_space<vmem>>, vector<1x1x32x32xf32>
    %20 = vector.shape_cast %19 : vector<1x1x32x32xf32> to vector<32x32xf32>
    %21 = vector.shape_cast %18 : vector<32x32xf32> to vector<1x1x32x32xf32>
    tpu.vector_store %arg6[%c0_19, %c1_20, %c0_21, %c0_22], %21 {strides = array<i32>} : memref<1x4x32x32xf32, #tpu.memory_space<vmem>>, vector<1x1x32x32xf32>,
    %c0_23 = arith.constant 0 : index
    %c2 = arith.constant 2 : index
    %c0_24 = arith.constant 0 : index
    %c0_25 = arith.constant 0 : index
    %22 = vector.load %arg5[%c0_23, %c2, %c0_24, %c0_25] : memref<1x4x16x16xf32, #tpu.memory_space<vmem>>, vector<1x1x16x16xf32>
    %23 = vector.shape_cast %22 : vector<1x1x16x16xf32> to vector<16x16xf32>
    %24 = arith.truncf %23 : vector<16x16xf32> to vector<16x16xbf16>
    %cst_26 = arith.constant dense<0.000000e+00> : vector<32x16xf32>
    %25 = tpu.matmul %1, %24, %cst_26 {dimension_numbers = #tpu.dot_dimension_numbers<[1], [0], [0], [1], [0, 0, 1, 1], [], []>} : vector<32x16xbf16>, vector<16x16xbf16>, vector<32x16xf32> -> vector<32x16xf32>
    %26 = arith.truncf %25 : vector<32x16xf32> to vector<32x16xbf16>
    %cst_27 = arith.constant dense<0.000000e+00> : vector<32x32xf32>
    %27 = tpu.matmul %26, %3, %cst_27 {dimension_numbers = #tpu.dot_dimension_numbers<[1], [0], [0], [1], [0, 0, 1, 1], [], []>} : vector<32x16xbf16>, vector<16x32xbf16>, vector<32x32xf32> -> vector<32x32xf32>
    %c0_28 = arith.constant 0 : index
    %c2_29 = arith.constant 2 : index
    %c0_30 = arith.constant 0 : index
    %c0_31 = arith.constant 0 : index
    %28 = vector.load %arg6[%c0_28, %c2_29, %c0_30, %c0_31] : memref<1x4x32x32xf32, #tpu.memory_space<vmem>>, vector<1x1x32x32xf32>
    %29 = vector.shape_cast %28 : vector<1x1x32x32xf32> to vector<32x32xf32>
    %30 = vector.shape_cast %27 : vector<32x32xf32> to vector<1x1x32x32xf32>
    tpu.vector_store %arg6[%c0_28, %c2_29, %c0_30, %c0_31], %30 {strides = array<i32>} : memref<1x4x32x32xf32, #tpu.memory_space<vmem>>, vector<1x1x32x32xf32>,
    %c0_32 = arith.constant 0 : index
    %c3 = arith.constant 3 : index
    %c0_33 = arith.constant 0 : index
    %c0_34 = arith.constant 0 : index
    %31 = vector.load %arg5[%c0_32, %c3, %c0_33, %c0_34] : memref<1x4x16x16xf32, #tpu.memory_space<vmem>>, vector<1x1x16x16xf32>
    %32 = vector.shape_cast %31 : vector<1x1x16x16xf32> to vector<16x16xf32>
    %33 = arith.truncf %32 : vector<16x16xf32> to vector<16x16xbf16>
    %cst_35 = arith.constant dense<0.000000e+00> : vector<32x16xf32>
    %34 = tpu.matmul %1, %33, %cst_35 {dimension_numbers = #tpu.dot_dimension_numbers<[1], [0], [0], [1], [0, 0, 1, 1], [], []>} : vector<32x16xbf16>, vector<16x16xbf16>, vector<32x16xf32> -> vector<32x16xf32>
    %35 = arith.truncf %34 : vector<32x16xf32> to vector<32x16xbf16>
    %cst_36 = arith.constant dense<0.000000e+00> : vector<32x32xf32>
    %36 = tpu.matmul %35, %3, %cst_36 {dimension_numbers = #tpu.dot_dimension_numbers<[1], [0], [0], [1], [0, 0, 1, 1], [], []>} : vector<32x16xbf16>, vector<16x32xbf16>, vector<32x32xf32> -> vector<32x32xf32>
    %c0_37 = arith.constant 0 : index
    %c3_38 = arith.constant 3 : index
    %c0_39 = arith.constant 0 : index
    %c0_40 = arith.constant 0 : index
    %37 = vector.load %arg6[%c0_37, %c3_38, %c0_39, %c0_40] : memref<1x4x32x32xf32, #tpu.memory_space<vmem>>, vector<1x1x32x32xf32>
    %38 = vector.shape_cast %37 : vector<1x1x32x32xf32> to vector<32x32xf32>
    %39 = vector.shape_cast %36 : vector<32x32xf32> to vector<1x1x32x32xf32>
    tpu.vector_store %arg6[%c0_37, %c3_38, %c0_39, %c0_40], %39 {strides = array<i32>} : memref<1x4x32x32xf32, #tpu.memory_space<vmem>>, vector<1x1x32x32xf32>,
    return
  }
  func.func @transform_0(%arg0: i32, %arg1: memref<2xi32, #tpu.memory_space<smem>>, %arg2: memref<2xi32, #tpu.memory_space<smem>>) -> (i32, i32, i32) {
    %0 = arith.index_cast %arg0 : i32 to index
    %1 = memref.load %arg1[%0] : memref<2xi32, #tpu.memory_space<smem>>
    %c0_i32 = arith.constant 0 : i32
    %c0_i32_0 = arith.constant 0 : i32
    %c0_i32_1 = arith.constant 0 : i32
    return %1, %c0_i32, %c0_i32_0 : i32, i32, i32
  }
  func.func @transform_1(%arg0: i32, %arg1: memref<2xi32, #tpu.memory_space<smem>>, %arg2: memref<2xi32, #tpu.memory_space<smem>>) -> (i32, i32, i32) {
    %0 = arith.index_cast %arg0 : i32 to index
    %1 = memref.load %arg2[%0] : memref<2xi32, #tpu.memory_space<smem>>
    %c0_i32 = arith.constant 0 : i32
    %c0_i32_0 = arith.constant 0 : i32
    %c0_i32_1 = arith.constant 0 : i32
    return %1, %c0_i32, %c0_i32_0 : i32, i32, i32
  }
  func.func @transform_2(%arg0: i32, %arg1: memref<2xi32, #tpu.memory_space<smem>>, %arg2: memref<2xi32, #tpu.memory_space<smem>>) -> (i32, i32, i32, i32) {
    %c0_i32 = arith.constant 0 : i32
    %c0_i32_0 = arith.constant 0 : i32
    %c0_i32_1 = arith.constant 0 : i32
    %c0_i32_2 = arith.constant 0 : i32
    return %arg0, %c0_i32, %c0_i32_0, %c0_i32_1 : i32, i32, i32, i32
  }
  func.func @transform_3(%arg0: i32, %arg1: memref<2xi32, #tpu.memory_space<smem>>, %arg2: memref<2xi32, #tpu.memory_space<smem>>) -> (i32, i32, i32, i32) {
    %c0_i32 = arith.constant 0 : i32
    %c0_i32_0 = arith.constant 0 : i32
    %c0_i32_1 = arith.constant 0 : i32
    %c0_i32_2 = arith.constant 0 : i32
    return %arg0, %c0_i32, %c0_i32_0, %c0_i32_1 : i32, i32, i32, i32
  }
}

</mosaic_0001>

<bundles_post_ra>
// kernel: cls_data_augmentation.1
= control target key start
LH: loop header
LB: loop body
LE: loop exit
PB: predicated region body
PF: predicated region fallthrough
CT: control target
= control target key end

     0   :  { %s791_s24 = smov [#allocation3]   ;;  %s792_s25 = smov [#allocation4]   ;;  %s979_s0 = inlined_call_operand.vmem [shape: s32[2], index: 0, kind: input, shape index: {}]   ;;  %s980_s2 = inlined_call_operand.vmem [shape: bf16[2,32,16], index: 2, kind: input, shape index: {}]   ;;  %s981_s3 = inlined_call_operand.vmem [shape: bf16[2,16,32], index: 3, kind: input, shape index: {}]   ;;  %s982_s4 = inlined_call_operand.vmem [shape: f32[2,4,16,16], index: 4, kind: input, shape index: {}]   ;;  %s983_s5 = inlined_call_operand.hbm [shape: f32[2,4,32,32], index: 5, kind: output, shape index: {}]   ;;  %s984_s1 = inlined_call_operand.vmem [shape: s32[2], index: 1, kind: input, shape index: {}]  }
   0x1   :  { %s11_s20 = sshll.u32 %s979_s0, 4  ;;  %s16_s23 = sshll.u32 %s984_s1, 4  ;;  %s12_s20 = int_to_ptr.vmem [resolvable:$true] %s11_s20  ;;  %s17_s23 = int_to_ptr.vmem [resolvable:$true] %s16_s23 }
   0x2   :  { %14 = dma.vmem_to_smem %s12_s20, 16, %s791_s24, [#allocation2] }
   0x3   :  { %19 = dma.vmem_to_smem %s17_s23, 16, %s792_s25, [#allocation2] }
   0x4   :  { %769 = dma.done.wait [#allocation2], 32 }
   0x5   :  { %770 = vsyncadd [#allocation2], 4294967264 }
   0x6   :  { %22 = sfence }
   0x7   :  { %23 = vsyncpa [#allocation6], 0 }
   0x8   :  { %25 = vsyncpa [#allocation6 + $0x1], 0  ;;  %s831_s26 = smov 0   ;;  %s833_s27 = smov 0  }
   0x9   :  { %s835_s0 = smov 0   ;;  %s837_s28 = smov 0  }
   0xa LB: > { %s852_s1 = sadd.s32 4294967295, %s789_s28   ;;  %s589_s29 = sadd.s32 4294967294, %s789_s28   ;;  %s789_s28 = sphi %s837_s28, %s990_s28   ;;  %s785_s0 = sphi %s835_s0, %s989_s0   ;;  %s781_s27 = sphi %s833_s27, %s988_s27   ;;  %s777_s26 = sphi %s831_s26, %s987_s26  }
   0xb   : > { %s856_s30 = sadd.s32 1, %s789_s28   ;;  %s120_s6 = sadd.s32 1, %s785_s0 }
   0xc   : > { %s117_s7 = ssub.s32 %s789_s28, %s856_s30  ;;  %p130_p0 = scmp.ne.s32.totalorder %s785_s0, %s781_s27 }
   0xd   : > { %p118_p1 = scmp.eq.s32.totalorder %s117_s7, 0  ;;  %p131_p2 = scmp.eq.s32.totalorder %s852_s1, 1 }
   0xe   : > { %p136_p3 = scmp.ne.s32.totalorder %s781_s27, %s777_s26  ;;  %p137_p4 = scmp.eq.s32.totalorder %s589_s29, 1 }
   0xf   : > { %s867_s8 = scalar_select %p118_p1, %s785_s0, %s120_s6  }
  0x10   : > { %p869_p5 = por %p131_p2, %p130_p0  ;;  %p873_p6 = por %p137_p4, %p136_p3 }
  0x11   : > { %p592_p7 = scmp.ge.s32.totalorder %s789_s28, 1  ;;  %p183_p8 = scmp.lt.s32.totalorder %s789_s28, 3 }
  0x13   : > { %p184_p9 = pnand %p592_p7, %p183_p8 }
  0x14   : > { %p233_p10 = scmp.lt.s32.totalorder (!%p184_p9), %s852_s1, 1  ;;  %s219_s11 = sld [smem:[#allocation3 + %s852_s1]] (!%p184_p9) }
  0x15   : > { %187 = sbr.rel (%p184_p9) target bundleno = 371 (0x173), region = 32  ;;  %s226_s21 = sld [smem:[#allocation4 + %s852_s1]] (!%p184_p9) }
  0x16   : > { %s216_s29 = sand.u32 (!%p184_p9), 1, %s781_s27  }
  0x17   : > { %s593_s6 = sshll.u32 (!%p184_p9), %s216_s29, 7 }
  0x18   : > { %s911_s7 = scalar_lea.vmem (!%p184_p9), [#allocation5], %s593_s6 }
  0x19   : > { %s500_s15 = sshll.u32 (!%p184_p9), %s911_s7, 4  ;;  %s501_s15 = int_to_ptr.vmem [resolvable:$true] %s500_s15 }
  0x1a   : > { %s234_s12 = scalar_select %p233_p10, %s852_s1, 1  ;;  %vm258_vm0 = vcmask 130048   ;;  %vm317_vm1 = vcmask 261120  }
  0x1b   : > { %p220_p11 = scmp.lt.s32.totalorder %s219_s11, 1  ;;  %p227_p12 = scmp.lt.s32.totalorder %s226_s21, 1 }
  0x1c   : > { %s653_s13 = sshll.u32 %s234_s12, 6 }
  0x1d   : > { %s237_s16 = scalar_lea.vmem %s982_s4, %s653_s13  ;;  %s992_s11 = smov (!%p220_p11, %s219_s11), 1 }
  0x1e   : > { %v245_v0 = vld [vmem:[%s237_s16] sm:$0xff]  ;;  %v246_v1 = vld [vmem:[%s237_s16 + $0x8] sm:$0xff]  ;;  %v616_v2 = vld [vmem:[%s237_s16 + $0x10] sm:$0xff]  ;;  %s651_s17 = sshll.u32 %s992_s11, 4  ;;  %s994_s21 = smov (!%p227_p12, %s226_s21), 1 }
  0x1f   : > { %v247_v3 = vpack.c.bf16 %v246_v1, %v245_v0  ;;  %v617_v4 = vld [vmem:[%s237_s16 + $0x18] sm:$0xff]  ;;  %v636_v5 = vld [vmem:[%s237_s16 + $0x30] sm:$0xff]  ;;  %v626_v9 = vld [vmem:[%s237_s16 + $0x20] sm:$0xff]  ;;  %s224_s20 = scalar_lea.vmem %s980_s2, %s651_s17  ;;  %s652_s22 = sshll.u32 %s994_s21, 3 }
  0x20   : > { %v637_v6 = vld [vmem:[%s237_s16 + $0x38] sm:$0xff]  ;;  %v325_v7 = vpack.c.bf16 %v617_v4, %v616_v2  ;;  %v627_v10 = vld [vmem:[%s237_s16 + $0x28] sm:$0xff]  ;;  %v654_v12 = vld [vmem:[%s224_s20] sm:$0xff]  ;;  %s231_s25 = scalar_lea.vmem %s981_s3, %s652_s22  ;;  %s657_s11 = sshll.u32 %s852_s1, 7 }
  0x21   : > { %v435_v8 = vpack.c.bf16 %v637_v6, %v636_v5  ;;  %272 = vmatpush.bf16.msra.mxu0 %v247_v3  ;;  %v380_v11 = vpack.c.bf16 %v627_v10, %v626_v9  ;;  %v655_v13 = vld [vmem:[%s224_s20 + $0x8] sm:$0xff]  ;;  %v656_v14 = vld [vmem:[%s231_s25] sm:$0xff]  ;;  %s499_s14 = scalar_lea.hbm %s983_s5, %s657_s11  ;;  %s488_s17 = scalar_lea.sflag [#allocation6], %s216_s29 }
  0x22   : > { %333 = vmatpush.bf16.msra.mxu2 %v325_v7  ;;  %305 = vmatpush.bf16.msra.mxu1 %v656_v14  ;;  %s502_s16 = sshll.u32 %s499_s14, 4  ;;  %s745_s21 = scalar_lea.hbm %s983_s5, 256  ;;  %s503_s16 = int_to_ptr.hbm [resolvable:$true] %s502_s16 }
  0x23   : > { %360 = vmatpush.bf16.msra.mxu3 %v656_v14  ;;  %s739_s18 = sshra.s32 %s503_s16, 4  ;;  %s740_s18 = int_to_ptr.hbm [resolvable:$true] %s739_s18 }
  0x24   : > { %608 = vmatmul.msk.bf16.vlgmr.msra.gmra.mxu0 %vm258_vm0, %v654_v12  ;;  %s741_s19 = scalar_lea.hbm %s740_s18, 128  ;;  %p746_p2 = scmp.lt.s32.totalorder %s740_s18, %s983_s5 }
  0x25   : > { %388 = vmatpush.bf16.msrb.mxu0 %v380_v11  ;;  %618 = vmatmul.msk.bf16.vlgmr.msra.gmra.mxu2 %vm258_vm0, %v654_v12  ;;  %p742_p13 = scmp.ne.s32.totalorder %s740_s18, %s741_s19  ;;  %p747_p3 = scmp.lt.s32.totalorder %s745_s21, %s741_s19 }
  0x26   : > { %443 = vmatpush.bf16.msrb.mxu2 %v435_v8  ;;  %415 = vmatpush.bf16.msrb.mxu1 %v656_v14 }
  0x27   : > { %470 = vmatpush.bf16.msrb.mxu3 %v656_v14  ;;  %p743_p0 = pnand %p742_p13, %p869_p5  ;;  %p748_p4 = por %p747_p3, %p746_p2 }
  0x29   : > { %p744_p1 = pneg %p743_p0 }
  0x2b   : > { %p749_p7 = pnand %p748_p4, %p744_p1 }
  0x34   : > { %609 = vmatmul.msk.bf16.gmra.mxu0 %vm258_vm0, %v655_v13 }
  0x35   : > { %619 = vmatmul.msk.bf16.gmra.mxu2 %vm258_vm0, %v655_v13 }
  0x44   : > { %628 = vmatmul.msk.bf16.vlgmr.msrb.gmra.mxu0 %vm258_vm0, %v654_v12 }
  0x45   : > { %638 = vmatmul.msk.bf16.vlgmr.msrb.gmra.mxu2 %vm258_vm0, %v654_v12 }
  0x54   : > { %629 = vmatmul.msk.bf16.gmra.mxu0 %vm258_vm0, %v655_v13 }
  0x55   : > { %639 = vmatmul.msk.bf16.gmra.mxu2 %vm258_vm0, %v655_v13 }
  0xa1   : > { %v274_v15 = vpop.f32.mrf.mxu0 }
  0xa8   : > { %v335_v16 = vpop.f32.mrf.mxu2 }
  0xa9   : > { %v276_v17 = vpop.f32.mrf.mxu0 }
  0xaa   : > { %v284_v18 = vpack.c.bf16 %v276_v17, %v274_v15 }
  0xac   : > { %614 = vmatmul.msk.bf16.vlgmr.msra.gmra.mxu1 %vm258_vm0, %v284_v18 }
  0xb0   : > { %v337_v19 = vpop.f32.mrf.mxu2 }
  0xb1   : > { %v345_v20 = vpack.c.bf16 %v337_v19, %v335_v16  ;;  %v279_v21 = vpop.f32.mrf.mxu0 }
  0xb3   : > { %620 = vmatmul.msk.bf16.vlgmr.msra.gmra.mxu3 %vm258_vm0, %v345_v20 }
  0xb8   : > { %v340_v22 = vpop.f32.mrf.mxu2 }
  0xb9   : > { %v281_v23 = vpop.f32.mrf.mxu0 }
  0xba   : > { %v285_v24 = vpack.c.bf16 %v281_v23, %v279_v21 }
  0xbc   : > { %615 = vmatmul.msk.bf16.gmra.mxu1 %vm258_vm0, %v285_v24 }
  0xc0   : > { %v342_v25 = vpop.f32.mrf.mxu2 }
  0xc1   : > { %v346_v26 = vpack.c.bf16 %v342_v25, %v340_v22  ;;  %v390_v27 = vpop.f32.mrf.mxu0 }
  0xc3   : > { %621 = vmatmul.msk.bf16.gmra.mxu3 %vm258_vm0, %v346_v26 }
  0xc8   : > { %v445_v28 = vpop.f32.mrf.mxu2 }
  0xc9   : > { %v392_v29 = vpop.f32.mrf.mxu0 }
  0xca   : > { %v400_v30 = vpack.c.bf16 %v392_v29, %v390_v27 }
  0xcc   : > { %630 = vmatmul.msk.bf16.vlgmr.msrb.gmra.mxu1 %vm258_vm0, %v400_v30 }
  0xd0   : > { %v447_v31 = vpop.f32.mrf.mxu2 }
  0xd1   : > { %v455_v32 = vpack.c.bf16 %v447_v31, %v445_v28  ;;  %v395_v33 = vpop.f32.mrf.mxu0 }
  0xd3   : > { %640 = vmatmul.msk.bf16.vlgmr.msrb.gmra.mxu3 %vm258_vm0, %v455_v32 }
  0xd8   : > { %v450_v34 = vpop.f32.mrf.mxu2 }
  0xd9   : > { %v397_v35 = vpop.f32.mrf.mxu0 }
  0xda   : > { %v401_v36 = vpack.c.bf16 %v397_v35, %v395_v33 }
  0xdc   : > { %631 = vmatmul.msk.bf16.gmra.mxu1 %vm258_vm0, %v401_v36 }
  0xe0   : > { %v452_v37 = vpop.f32.mrf.mxu2 }
  0xe1   : > { %v456_v38 = vpack.c.bf16 %v452_v37, %v450_v34 }
  0xe3   : > { %641 = vmatmul.msk.bf16.gmra.mxu3 %vm258_vm0, %v456_v38 }
 0x129   : > { %v307_v39 = vpop.f32.mrf.mxu1 }
 0x12a   : > { %318 = vst.msk [vmem:[%s911_s7] sm:$0xff] %vm317_vm1, %v307_v39 }
 0x131   : > { %v309_v40 = vpop.f32.mrf.mxu1 }
 0x132   : > { %319 = vst.msk [vmem:[%s911_s7 + $0x8] sm:$0xff] %vm317_vm1, %v309_v40 }
 0x136   : > { %v362_v41 = vpop.f32.mrf.mxu3 }
 0x137   : > { %622 = vst.msk [vmem:[%s911_s7 + $0x20] sm:$0xff] %vm317_vm1, %v362_v41 }
 0x139   : > { %v312_v42 = vpop.f32.mrf.mxu1 }
 0x13a   : > { %320 = vst.msk [vmem:[%s911_s7 + $0x10] sm:$0xff] %vm317_vm1, %v312_v42 }
 0x13e   : > { %v364_v43 = vpop.f32.mrf.mxu3 }
 0x13f   : > { %623 = vst.msk [vmem:[%s911_s7 + $0x28] sm:$0xff] %vm317_vm1, %v364_v43 }
 0x141   : > { %v314_v44 = vpop.f32.mrf.mxu1 }
 0x142   : > { %321 = vst.msk [vmem:[%s911_s7 + $0x18] sm:$0xff] %vm317_vm1, %v314_v44 }
 0x146   : > { %v367_v45 = vpop.f32.mrf.mxu3 }
 0x147   : > { %624 = vst.msk [vmem:[%s911_s7 + $0x30] sm:$0xff] %vm317_vm1, %v367_v45 }
 0x149   : > { %v417_v46 = vpop.f32.mrf.mxu1 }
 0x14a   : > { %632 = vst.msk [vmem:[%s911_s7 + $0x40] sm:$0xff] %vm317_vm1, %v417_v46 }
 0x14e   : > { %v369_v47 = vpop.f32.mrf.mxu3 }
 0x14f   : > { %625 = vst.msk [vmem:[%s911_s7 + $0x38] sm:$0xff] %vm317_vm1, %v369_v47 }
 0x151   : > { %v419_v48 = vpop.f32.mrf.mxu1 }
 0x152   : > { %633 = vst.msk [vmem:[%s911_s7 + $0x48] sm:$0xff] %vm317_vm1, %v419_v48 }
 0x156   : > { %v472_v49 = vpop.f32.mrf.mxu3 }
 0x157   : > { %642 = vst.msk [vmem:[%s911_s7 + $0x60] sm:$0xff] %vm317_vm1, %v472_v49 }
 0x159   : > { %v422_v50 = vpop.f32.mrf.mxu1 }
 0x15a   : > { %634 = vst.msk [vmem:[%s911_s7 + $0x50] sm:$0xff] %vm317_vm1, %v422_v50 }
 0x15e   : > { %v474_v51 = vpop.f32.mrf.mxu3 }
 0x15f   : > { %643 = vst.msk [vmem:[%s911_s7 + $0x68] sm:$0xff] %vm317_vm1, %v474_v51 }
 0x161   : > { %v424_v52 = vpop.f32.mrf.mxu1 }
 0x162   : > { %635 = vst.msk [vmem:[%s911_s7 + $0x58] sm:$0xff] %vm317_vm1, %v424_v52 }
 0x166   : > { %v477_v53 = vpop.f32.mrf.mxu3 }
 0x167   : > { %644 = vst.msk [vmem:[%s911_s7 + $0x70] sm:$0xff] %vm317_vm1, %v477_v53 }
 0x16e   : > { %v479_v54 = vpop.f32.mrf.mxu3 }
 0x16f   : > { %645 = vst.msk [vmem:[%s911_s7 + $0x78] sm:$0xff] %vm317_vm1, %v479_v54 }
 0x170   : > { %752 = shalt.err (!%p749_p7)
}
 0x171   : > { %s793_s24 = smov 128   ;;  %s794_s25 = smov 8  }
 0x172   : > { %658 = dma.vmem_to_hbm [thread:$0]  (%p869_p5), %s501_s15, 2048, %s503_s16, %s488_s17, %s793_s24, %s793_s24, %s794_s25  }
 0x173 PF: > { %p664_p8 = scmp.ge.s32.totalorder %s789_s28, 2  ;;  %s517_s29 = sand.u32 1, %s777_s26  }
 0x174   : > { %s518_s6 = scalar_lea.sflag [#allocation6], %s517_s29 }
 0x175   : > { %p661_p9 = pnand %p664_p8, %p873_p6 }
 0x177   : > { %p662_p10 = pneg %p661_p9 }
 0x179   : > { %772 = dma.done.wait (%p662_p10), %s518_s6, 2048  }
 0x17a   : > { %774 = vsyncadd (%p662_p10), %s518_s6, 4294965248  ;;  %p28_p11 = scmp.ge.s32.totalorder %s856_s30, 4   ;;  %s987_s26 = smov %s781_s27 }
 0x17b   : > { %s988_s27 = smov %s785_s0  ;;  %s989_s0 = smov %s867_s8 }
 0x17c   : > { %s990_s28 = smov %s856_s30  ;;  %30 = sbr.rel (!%p28_p11) target bundleno = 10 (0xa), region = 79 }
 0x181   :  { %524 = vsyncpa [#allocation6], 1 }
 0x182   :  { %526 = vsyncpa [#allocation6 + $0x1], 1 }

</bundles_post_ra>
